<compile_context>
chip_gen: v6e
topology: v6e:2x2x1
jax: 0.10.0
libtpu: 0.0.40
codegen_flags: <defaults>
</compile_context>

<pallas_src>
import jax
import jax.numpy as jnp
from jax import lax
from jax.experimental import pallas as pl
from jax.experimental.pallas import tpu as pltpu


def dice_partial_kernel(yp_ref, yt_ref, a_ref, b_ref, c_ref):
    # yp_ref: (B, C, tile_s) logits tile, native dtype (f32 / bf16 / ...)
    # yt_ref: (B, tile_s)    integer label tile, native dtype
    # a_ref/b_ref/c_ref: (1, B, C, AW) f32 lane-dense per-group accumulators
    t = pl.program_id(1)

    @pl.when(t == 0)
    def _init():
        a_ref[...] = jnp.zeros_like(a_ref)
        b_ref[...] = jnp.zeros_like(b_ref)
        c_ref[...] = jnp.zeros_like(c_ref)

    B, C, tile_s = yp_ref.shape
    AW = a_ref.shape[-1]
    nchunks = tile_s // AW

    # Hoisted out of the chunk loop (loop-invariant): class id per sublane row.
    class_ids = lax.broadcasted_iota(jnp.int32, (1, C, AW), 1)

    def chunk_body(k, carry):
        a_acc, b_acc, c_acc = carry
        off = pl.multiple_of(k * AW, AW)
        x = yp_ref[:, :, pl.ds(off, AW)].astype(jnp.float32)      # (B, C, AW)
        lab = yt_ref[:, pl.ds(off, AW)].astype(jnp.int32)         # (B, AW)
        # sigmoid with a single EUP transcendental per element.
        p = jnp.tanh(x * 0.5) * 0.5 + 0.5                         # (B, C, AW)
        mask = lab[:, None, :] == class_ids                       # (B, C, AW) bool
        a_acc = a_acc + jnp.where(mask, p, 0.0)
        b_acc = b_acc + p * p
        c_acc = c_acc + jnp.where(mask, 1.0, 0.0)                 # target is 0/1
        return a_acc, b_acc, c_acc

    zeros = jnp.zeros((B, C, AW), jnp.float32)
    a_fin, b_fin, c_fin = lax.fori_loop(0, nchunks, chunk_body,
                                        (zeros, zeros, zeros))

    a_ref[0] += a_fin
    b_ref[0] += b_fin
    c_ref[0] += c_fin


def _choose_tile_s(S_pad, B, C, logits_itemsize, label_itemsize, block_budget):
    """Largest lane-aligned divisor of S_pad whose double-buffered input blocks
    (sublane padding included) fit `block_budget` bytes; prefers an even tile
    count so the parallel group axis can be split across both TensorCores."""
    pad8 = lambda n: -(-n // 8) * 8          # second-minor dim pads to 8 sublanes
    bytes_per_s = 2 * (B * pad8(C) * logits_itemsize + pad8(B) * label_itemsize)
    cap = max(128, (block_budget // bytes_per_s) // 128 * 128)
    cap = min(cap, S_pad)

    best, best_even = 128, None
    for cand in range(128, cap + 1, 128):
        if S_pad % cand:
            continue
        best = cand
        if (S_pad // cand) % 2 == 0:
            best_even = cand
    return best_even if best_even is not None else best


def dice_loss(ypred, ytgt, num_classes, *, tile_s=None, accum_width=128,
              block_budget_bytes=24 << 20):
    B, C, H, W = ypred.shape
    assert C == num_classes
    S = H * W

    # Free, contiguous reshapes only — native dtypes, logits read once from HBM.
    yp = ypred.reshape(B, C, S)
    yt = ytgt.reshape(B, S)

    # Pad the spatial axis to a lane multiple instead of a full-extent block.
    # Padded logits -> sigmoid == 0 exactly; padded labels match no class.
    S_pad = -(-S // 128) * 128
    if S_pad != S:
        yp = jnp.pad(yp, ((0, 0), (0, 0), (0, S_pad - S)), constant_values=-1e9)
        yt = jnp.pad(yt, ((0, 0), (0, S_pad - S)), constant_values=num_classes)

    if tile_s is None:
        tile_s = _choose_tile_s(S_pad, B, C, yp.dtype.itemsize, yt.dtype.itemsize,
                                block_budget_bytes)
    assert accum_width % 128 == 0 and tile_s % accum_width == 0
    assert S_pad % tile_s == 0
    num_tiles = S_pad // tile_s

    # Parallel group axis (megacore on v7x); falls back to 1 group otherwise.
    G = 2 if (num_tiles % 2 == 0 and num_tiles >= 2) else 1
    T = num_tiles // G
    AW = accum_width

    out_block = pl.BlockSpec((1, B, C, AW), lambda g, t: (g, 0, 0, 0))

    a, b, c = pl.pallas_call(
        dice_partial_kernel,
        out_shape=[jax.ShapeDtypeStruct((G, B, C, AW), jnp.float32)] * 3,
        grid_spec=pltpu.PrefetchScalarGridSpec(
            num_scalar_prefetch=0,
            grid=(G, T),
            in_specs=[
                pl.BlockSpec((B, C, tile_s), lambda g, t: (0, 0, g * T + t)),
                pl.BlockSpec((B, tile_s), lambda g, t: (0, g * T + t)),
            ],
            out_specs=[out_block, out_block, out_block],
        ),
        compiler_params=pltpu.CompilerParams(
            dimension_semantics=("parallel", "arbitrary"),
            vmem_limit_bytes=32 * 1024 * 1024,   # safe on v5e/v6e/v7x
        ),
    )(yp, yt)

    # Tiny finalization on (G, B, C, 128) partials (negligible vs streamed data).
    a_tot = jnp.sum(a, axis=(0, 3))                       # (B, C)
    b_tot = jnp.sum(b, axis=(0, 3)) + 0.001
    c_tot = jnp.sum(c, axis=(0, 3)) + 0.001
    d = 2.0 * a_tot / (b_tot + c_tot)                     # (B, C)
    return jnp.sum(jnp.mean(1.0 - d, axis=0))             # sum_C mean_B


def dice_loss_ref(ypred, ytgt, num_classes):
    # Pure-JAX transcription of the PyTorch forward (for verification).
    loss = jnp.float32(0.0)
    B = ypred.shape[0]
    for i in range(num_classes):
        target = (ytgt == i).astype(jnp.float32).reshape(B, -1)
        inp = jax.nn.sigmoid(ypred[:, i]).reshape(B, -1)
        a = jnp.sum(inp * target, axis=1)
        b = jnp.sum(inp * inp, axis=1) + 0.001
        c = jnp.sum(target * target, axis=1) + 0.001
        d = 2.0 * a / (b + c)
        loss = loss + jnp.mean(1.0 - d)
    return loss


if __name__ == "__main__":
    num_classes = 4
    B, H, W = 2, 32, 32   # S = 1024

    key = jax.random.PRNGKey(0)
    k1, k2 = jax.random.split(key)
    ypred = jax.random.normal(k1, (B, num_classes, H, W), dtype=jnp.float32)
    ytgt = jax.random.randint(k2, (B, H, W), 0, num_classes, dtype=jnp.int32)

    ref = jax.block_until_ready(dice_loss_ref(ypred, ytgt, num_classes))

    # Explicit tile_s=128 -> 8 tiles -> grid (G=2 parallel, T=4 arbitrary):
    # exercises the megacore split and the in-kernel tile accumulation.
    out = jax.block_until_ready(dice_loss(ypred, ytgt, num_classes, tile_s=128))
    assert jnp.allclose(out, ref, rtol=1e-5, atol=1e-4), (out, ref)

    # Auto-tiling path (prefers an even tile count -> G=2) must agree.
    out2 = jax.block_until_ready(dice_loss(ypred, ytgt, num_classes))
    assert jnp.allclose(out2, ref, rtol=1e-5, atol=1e-4), (out2, ref)

    # Non-128-multiple spatial size exercises the host pad path (S=576 -> 640).
    H3, W3 = 24, 24
    ypred3 = jax.random.normal(k1, (B, num_classes, H3, W3), dtype=jnp.float32)
    ytgt3 = jax.random.randint(k2, (B, H3, W3), 0, num_classes, dtype=jnp.int32)
    out3 = jax.block_until_ready(dice_loss(ypred3, ytgt3, num_classes))
    ref3 = jax.block_until_ready(dice_loss_ref(ypred3, ytgt3, num_classes))
    assert jnp.allclose(out3, ref3, rtol=1e-5, atol=1e-4), (out3, ref3)

    print("KERNEL_OK")
</pallas_src>

<mosaic_0001>
module attributes {stable_mosaic.version = 11 : i64} {
  func.func @dice_partial_kernel(%arg0: i32, %arg1: i32, %arg2: memref<2x4x128xf32, #tpu.memory_space<vmem>>, %arg3: memref<2x128xi32, #tpu.memory_space<vmem>>, %arg4: memref<1x2x4x128xf32, #tpu.memory_space<vmem>>, %arg5: memref<1x2x4x128xf32, #tpu.memory_space<vmem>>, %arg6: memref<1x2x4x128xf32, #tpu.memory_space<vmem>>) attributes {dimension_semantics = [#tpu.dimension_semantics<parallel>, #tpu.dimension_semantics<arbitrary>], iteration_bounds = array<i64: 2, 4>, scalar_prefetch = 0 : i64, scratch_operands = 0 : i64, tpu.core_type = #tpu.core_type<tc>, window_params = [{transform_indices = @transform_0, window_bounds = array<i64: 2, 4, 128>}, {transform_indices = @transform_1, window_bounds = array<i64: 2, 128>}, {transform_indices = @transform_2, window_bounds = array<i64: 1, 2, 4, 128>}, {transform_indices = @transform_3, window_bounds = array<i64: 1, 2, 4, 128>}, {transform_indices = @transform_4, window_bounds = array<i64: 1, 2, 4, 128>}]} {
    %c0_i32 = arith.constant 0 : i32
    %0 = arith.cmpi eq, %arg1, %c0_i32 : i32
    %1 = arith.extui %0 : i1 to i32
    %c0_i32_0 = arith.constant 0 : i32
    %2 = arith.cmpi ne, %1, %c0_i32_0 : i32
    scf.if %2 {
      %cst_34 = arith.constant 0.000000e+00 : f32
      %49 = vector.broadcast %cst_34 : f32 to vector<1x2x4x128xf32>
      %c0_35 = arith.constant 0 : index
      %c0_36 = arith.constant 0 : index
      %c0_37 = arith.constant 0 : index
      %c0_38 = arith.constant 0 : index
      %50 = vector.load %arg4[%c0_35, %c0_36, %c0_37, %c0_38] : memref<1x2x4x128xf32, #tpu.memory_space<vmem>>, vector<1x2x4x128xf32>
      tpu.vector_store %arg4[%c0_35, %c0_36, %c0_37, %c0_38], %49 {strides = array<i32>} : memref<1x2x4x128xf32, #tpu.memory_space<vmem>>, vector<1x2x4x128xf32>,
      %cst_39 = arith.constant 0.000000e+00 : f32
      %51 = vector.broadcast %cst_39 : f32 to vector<1x2x4x128xf32>
      %c0_40 = arith.constant 0 : index
      %c0_41 = arith.constant 0 : index
      %c0_42 = arith.constant 0 : index
      %c0_43 = arith.constant 0 : index
      %52 = vector.load %arg5[%c0_40, %c0_41, %c0_42, %c0_43] : memref<1x2x4x128xf32, #tpu.memory_space<vmem>>, vector<1x2x4x128xf32>
      tpu.vector_store %arg5[%c0_40, %c0_41, %c0_42, %c0_43], %51 {strides = array<i32>} : memref<1x2x4x128xf32, #tpu.memory_space<vmem>>, vector<1x2x4x128xf32>,
      %cst_44 = arith.constant 0.000000e+00 : f32
      %53 = vector.broadcast %cst_44 : f32 to vector<1x2x4x128xf32>
      %c0_45 = arith.constant 0 : index
      %c0_46 = arith.constant 0 : index
      %c0_47 = arith.constant 0 : index
      %c0_48 = arith.constant 0 : index
      %54 = vector.load %arg6[%c0_45, %c0_46, %c0_47, %c0_48] : memref<1x2x4x128xf32, #tpu.memory_space<vmem>>, vector<1x2x4x128xf32>
      tpu.vector_store %arg6[%c0_45, %c0_46, %c0_47, %c0_48], %53 {strides = array<i32>} : memref<1x2x4x128xf32, #tpu.memory_space<vmem>>, vector<1x2x4x128xf32>,
    } else {
    }
    %3 = tpu.iota {dimensions = array<i32: 1>} : vector<1x4x128xi32>
    %cst = arith.constant 0.000000e+00 : f32
    %4 = vector.broadcast %cst : f32 to vector<2x4x128xf32>
    %c0_i32_1 = arith.constant 0 : i32
    %c128_i32 = arith.constant 128 : i32
    %5 = arith.muli %c0_i32_1, %c128_i32 : i32
    %6 = tpu.assume_multiple %5, 128 : i32
    %c0 = arith.constant 0 : index
    %c0_2 = arith.constant 0 : index
    %7 = arith.index_cast %6 : i32 to index
    %8 = vector.load %arg2[%c0, %c0_2, %7] : memref<2x4x128xf32, #tpu.memory_space<vmem>>, vector<2x4x128xf32>
    %c0_3 = arith.constant 0 : index
    %9 = arith.index_cast %6 : i32 to index
    %10 = vector.load %arg3[%c0_3, %9] : memref<2x128xi32, #tpu.memory_space<vmem>>, vector<2x128xi32>
    %cst_4 = arith.constant 5.000000e-01 : f32
    %11 = vector.broadcast %cst_4 : f32 to vector<2x4x128xf32>
    %12 = arith.mulf %8, %11 : vector<2x4x128xf32>
    %13 = math.tanh %12 : vector<2x4x128xf32>
    %cst_5 = arith.constant 5.000000e-01 : f32
    %14 = vector.broadcast %cst_5 : f32 to vector<2x4x128xf32>
    %15 = arith.mulf %13, %14 : vector<2x4x128xf32>
    %cst_6 = arith.constant 5.000000e-01 : f32
    %16 = vector.broadcast %cst_6 : f32 to vector<2x4x128xf32>
    %17 = arith.addf %15, %16 : vector<2x4x128xf32>
    %18 = vector.shape_cast %10 : vector<2x128xi32> to vector<2x1x128xi32>
    %19 = vector.broadcast %18 : vector<2x1x128xi32> to vector<2x4x128xi32>
    %20 = vector.broadcast %3 : vector<1x4x128xi32> to vector<2x4x128xi32>
    %21 = arith.cmpi eq, %19, %20 : vector<2x4x128xi32>
    %cst_7 = arith.constant 0.000000e+00 : f32
    %22 = vector.broadcast %cst_7 : f32 to vector<2x4x128xf32>
    %23 = arith.select %21, %17, %22 : vector<2x4x128xi1>, vector<2x4x128xf32>
    %24 = arith.addf %4, %23 : vector<2x4x128xf32>
    %25 = arith.mulf %17, %17 : vector<2x4x128xf32>
    %26 = arith.addf %4, %25 : vector<2x4x128xf32>
    %cst_8 = arith.constant 1.000000e+00 : f32
    %cst_9 = arith.constant 0.000000e+00 : f32
    %27 = vector.broadcast %cst_8 : f32 to vector<2x4x128xf32>
    %28 = vector.broadcast %cst_9 : f32 to vector<2x4x128xf32>
    %29 = arith.select %21, %27, %28 : vector<2x4x128xi1>, vector<2x4x128xf32>
    %30 = arith.addf %4, %29 : vector<2x4x128xf32>
    %c1_i32 = arith.constant 1 : i32
    %c0_10 = arith.constant 0 : index
    %c0_11 = arith.constant 0 : index
    %c0_12 = arith.constant 0 : index
    %c0_13 = arith.constant 0 : index
    %31 = vector.load %arg4[%c0_10, %c0_11, %c0_12, %c0_13] : memref<1x2x4x128xf32, #tpu.memory_space<vmem>>, vector<1x2x4x128xf32>
    %32 = vector.shape_cast %31 : vector<1x2x4x128xf32> to vector<2x4x128xf32>
    %33 = arith.addf %32, %24 : vector<2x4x128xf32>
    %c0_14 = arith.constant 0 : index
    %c0_15 = arith.constant 0 : index
    %c0_16 = arith.constant 0 : index
    %c0_17 = arith.constant 0 : index
    %34 = vector.load %arg4[%c0_14, %c0_15, %c0_16, %c0_17] : memref<1x2x4x128xf32, #tpu.memory_space<vmem>>, vector<1x2x4x128xf32>
    %35 = vector.shape_cast %34 : vector<1x2x4x128xf32> to vector<2x4x128xf32>
    %36 = vector.shape_cast %33 : vector<2x4x128xf32> to vector<1x2x4x128xf32>
    tpu.vector_store %arg4[%c0_14, %c0_15, %c0_16, %c0_17], %36 {strides = array<i32>} : memref<1x2x4x128xf32, #tpu.memory_space<vmem>>, vector<1x2x4x128xf32>,
    %c0_18 = arith.constant 0 : index
    %c0_19 = arith.constant 0 : index
    %c0_20 = arith.constant 0 : index
    %c0_21 = arith.constant 0 : index
    %37 = vector.load %arg5[%c0_18, %c0_19, %c0_20, %c0_21] : memref<1x2x4x128xf32, #tpu.memory_space<vmem>>, vector<1x2x4x128xf32>
    %38 = vector.shape_cast %37 : vector<1x2x4x128xf32> to vector<2x4x128xf32>
    %39 = arith.addf %38, %26 : vector<2x4x128xf32>
    %c0_22 = arith.constant 0 : index
    %c0_23 = arith.constant 0 : index
    %c0_24 = arith.constant 0 : index
    %c0_25 = arith.constant 0 : index
    %40 = vector.load %arg5[%c0_22, %c0_23, %c0_24, %c0_25] : memref<1x2x4x128xf32, #tpu.memory_space<vmem>>, vector<1x2x4x128xf32>
    %41 = vector.shape_cast %40 : vector<1x2x4x128xf32> to vector<2x4x128xf32>
    %42 = vector.shape_cast %39 : vector<2x4x128xf32> to vector<1x2x4x128xf32>
    tpu.vector_store %arg5[%c0_22, %c0_23, %c0_24, %c0_25], %42 {strides = array<i32>} : memref<1x2x4x128xf32, #tpu.memory_space<vmem>>, vector<1x2x4x128xf32>,
    %c0_26 = arith.constant 0 : index
    %c0_27 = arith.constant 0 : index
    %c0_28 = arith.constant 0 : index
    %c0_29 = arith.constant 0 : index
    %43 = vector.load %arg6[%c0_26, %c0_27, %c0_28, %c0_29] : memref<1x2x4x128xf32, #tpu.memory_space<vmem>>, vector<1x2x4x128xf32>
    %44 = vector.shape_cast %43 : vector<1x2x4x128xf32> to vector<2x4x128xf32>
    %45 = arith.addf %44, %30 : vector<2x4x128xf32>
    %c0_30 = arith.constant 0 : index
    %c0_31 = arith.constant 0 : index
    %c0_32 = arith.constant 0 : index
    %c0_33 = arith.constant 0 : index
    %46 = vector.load %arg6[%c0_30, %c0_31, %c0_32, %c0_33] : memref<1x2x4x128xf32, #tpu.memory_space<vmem>>, vector<1x2x4x128xf32>
    %47 = vector.shape_cast %46 : vector<1x2x4x128xf32> to vector<2x4x128xf32>
    %48 = vector.shape_cast %45 : vector<2x4x128xf32> to vector<1x2x4x128xf32>
    tpu.vector_store %arg6[%c0_30, %c0_31, %c0_32, %c0_33], %48 {strides = array<i32>} : memref<1x2x4x128xf32, #tpu.memory_space<vmem>>, vector<1x2x4x128xf32>,
    return
  }
  func.func @transform_0(%arg0: i32, %arg1: i32) -> (i32, i32, i32) {
    %c4_i32 = arith.constant 4 : i32
    %0 = arith.muli %arg0, %c4_i32 : i32
    %1 = arith.addi %0, %arg1 : i32
    %c0_i32 = arith.constant 0 : i32
    %c0_i32_0 = arith.constant 0 : i32
    %c0_i32_1 = arith.constant 0 : i32
    return %c0_i32, %c0_i32_0, %1 : i32, i32, i32
  }
  func.func @transform_1(%arg0: i32, %arg1: i32) -> (i32, i32) {
    %c4_i32 = arith.constant 4 : i32
    %0 = arith.muli %arg0, %c4_i32 : i32
    %1 = arith.addi %0, %arg1 : i32
    %c0_i32 = arith.constant 0 : i32
    %c0_i32_0 = arith.constant 0 : i32
    return %c0_i32, %1 : i32, i32
  }
  func.func @transform_2(%arg0: i32, %arg1: i32) -> (i32, i32, i32, i32) {
    %c0_i32 = arith.constant 0 : i32
    %c0_i32_0 = arith.constant 0 : i32
    %c0_i32_1 = arith.constant 0 : i32
    %c0_i32_2 = arith.constant 0 : i32
    return %arg0, %c0_i32, %c0_i32_0, %c0_i32_1 : i32, i32, i32, i32
  }
  func.func @transform_3(%arg0: i32, %arg1: i32) -> (i32, i32, i32, i32) {
    %c0_i32 = arith.constant 0 : i32
    %c0_i32_0 = arith.constant 0 : i32
    %c0_i32_1 = arith.constant 0 : i32
    %c0_i32_2 = arith.constant 0 : i32
    return %arg0, %c0_i32, %c0_i32_0, %c0_i32_1 : i32, i32, i32, i32
  }
  func.func @transform_4(%arg0: i32, %arg1: i32) -> (i32, i32, i32, i32) {
    %c0_i32 = arith.constant 0 : i32
    %c0_i32_0 = arith.constant 0 : i32
    %c0_i32_1 = arith.constant 0 : i32
    %c0_i32_2 = arith.constant 0 : i32
    return %arg0, %c0_i32, %c0_i32_0, %c0_i32_1 : i32, i32, i32, i32
  }
}

</mosaic_0001>

<bundles_post_ra>
// kernel: tpu_custom_call.1
= control target key start
LH: loop header
LB: loop body
LE: loop exit
PB: predicated region body
PF: predicated region fallthrough
CT: control target
= control target key end

     0   :  { %s1391_s0 = inlined_call_operand.hbm [shape: f32[2,4,1024], index: 0, kind: input, shape index: {}]   ;;  %s1392_s1 = inlined_call_operand.hbm [shape: s32[2,1024], index: 1, kind: input, shape index: {}]   ;;  %s1393_s2 = inlined_call_operand.hbm [shape: f32[2,2,4,128], index: 2, kind: output, shape index: {0}]   ;;  %s1394_s3 = inlined_call_operand.hbm [shape: f32[2,2,4,128], index: 3, kind: output, shape index: {1}]   ;;  %s1395_s4 = inlined_call_operand.hbm [shape: f32[2,2,4,128], index: 4, kind: output, shape index: {2}]  }
   0x1   :  { %1405 = sst [smem:[#allocation25_spill]] %s1391_s0 }
   0x2   :  { %10 = vsyncpa [#allocation3], 0 }
   0x3   :  { %12 = vsyncpa [#allocation3 + $0x1], 0 }
   0x4   :  { %13 = vsyncpa [#allocation6], 0 }
   0x5   :  { %15 = vsyncpa [#allocation6 + $0x1], 0 }
   0x6   :  { %16 = vsyncpa [#allocation4], 0 }
   0x7   :  { %18 = vsyncpa [#allocation4 + $0x1], 0 }
   0x8   :  { %19 = vsyncpa [#allocation9], 0 }
   0x9   :  { %21 = vsyncpa [#allocation9 + $0x1], 0  ;;  %s1052_s15 = smov 0   ;;  %s1054_s16 = smov 0  }
   0xa   :  { %s1056_s17 = smov 0   ;;  %s1058_s18 = smov 0  }
   0xb   :  { %s1060_s19 = smov 0   ;;  %s1062_s20 = smov 0  }
   0xc   :  { %s1064_s21 = smov 0   ;;  %s1066_s22 = smov 0  }
   0xd   :  { %s1068_s23 = smov 0   ;;  %s1070_s24 = smov 0  }
   0xe   :  { %s1072_s25 = smov 0  }
   0xf LB: > { %1406 = sst [smem:[#allocation15_spill]] %s972_s15  ;;  %s1106_s26 = sadd.s32 4294967295, %s1012_s25   ;;  %s1012_s25 = sphi %s1072_s25, %s27_s25   ;;  %s1008_s24 = sphi %s1070_s24, %s1433_s24   ;;  %s1004_s23 = sphi %s1068_s23, %s1432_s23   ;;  %s1000_s22 = sphi %s1066_s22, %s1431_s22   ;;  %s996_s21 = sphi %s1064_s21, %s1430_s21   ;;  %s992_s20 = sphi %s1062_s20, %s1429_s20   ;;  %s988_s19 = sphi %s1060_s19, %s1437_s19   ;;  %s984_s18 = sphi %s1058_s18, %s1436_s18   ;;  %s980_s17 = sphi %s1056_s17, %s1427_s17   ;;  %s976_s16 = sphi %s1054_s16, %s1435_s16   ;;  %s972_s15 = sphi %s1052_s15, %s1434_s15  }
  0x10   : > { %1407 = sst [smem:[#allocation16_spill]] %s980_s17  ;;  %s1399_s27 = sadd.s32 4294967294, %s1012_s25  }
  0x11   : > { %1408 = sst [smem:[#allocation17_spill]] %s992_s20  ;;  %s36_s28 = sadd.s32 1, %s1004_s23 }
  0x12   : > { %1409 = sst [smem:[#allocation18_spill]] %s1004_s23  ;;  %s39_s29 = sadd.s32 1, %s1008_s24 }
  0x13   : > { %1410 = sst [smem:[#allocation19_spill]] %s1008_s24  ;;  %p37_p0 = scmp.ge.s32.totalorder %s36_s28, 4 }
  0x14   : > { %s613_s30 = sshll.u32 %s1008_s24, 2  ;;  %s50_s6 = sadd.s32 1, %s992_s20 }
  0x15   : > { %s1113_s5 = sadd.s32 %s1004_s23, %s613_s30  ;;  %s1439_s28 = smov (%p37_p0, %s36_s28), 0 }
  0x16   : > { %1411 = sst [smem:[#allocation20_spill]] %s1439_s28  ;;  %s1441_s29 = smov (!%p37_p0, %s39_s29), %s1008_s24 }
  0x17   : > { %p57_p1 = scmp.ne.s32.totalorder %s992_s20, %s988_s19  ;;  %p58_p2 = scmp.eq.s32.totalorder %s1012_s25, 0 }
  0x18   : > { %p41_p3 = scmp.ge.s32.totalorder %s1441_s29, 2  ;;  %p63_p4 = scmp.ne.s32.totalorder %s988_s19, %s984_s18 }
  0x19   : > { %p1123_p5 = por %p58_p2, %p57_p1  ;;  %p64_p6 = scmp.eq.s32.totalorder %s1106_s26, 0 }
  0x1a   : > { %s1443_s29 = smov (%p41_p3, %s1441_s29), 0  ;;  %s106_s9 = sadd.s32 1, %s980_s17 }
  0x1b   : > { %1413 = sst [smem:[#allocation21_spill]] %s1443_s29  ;;  %p1130_p7 = por %p64_p6, %p63_p4 }
  0x1c   : > { %s614_s10 = sshll.u32 %s1443_s29, 2  ;;  %s103_s11 = ssub.s32 %s1008_s24, %s1443_s29 }
  0x1d   : > { %s46_s12 = sadd.s32 %s614_s10, %s1439_s28  ;;  %p104_p8 = scmp.eq.s32.totalorder %s103_s11, 0 }
  0x1e   : > { %s47_s13 = ssub.s32 %s1113_s5, %s46_s12  ;;  %p116_p9 = scmp.ne.s32.totalorder %s980_s17, %s976_s16 }
  0x1f   : > { %p48_p10 = scmp.eq.s32.totalorder %s47_s13, 0  ;;  %p117_p11 = scmp.eq.s32.totalorder %s1106_s26, 7 }
  0x20   : > { %s1144_s14 = scalar_select %p104_p8, %s980_s17, %s106_s9  }
  0x21   : > { %s1147_s18 = scalar_select %p48_p10, %s992_s20, %s50_s6  }
  0x22   : > { %1415 = sst [smem:[#allocation22_spill]] %s1144_s14  ;;  %p1149_p12 = por %p117_p11, %p116_p9 }
  0x23   : > { %1416 = sst [smem:[#allocation23_spill]] %s1147_s18  ;;  %p122_p13 = scmp.ne.s32.totalorder %s976_s16, %s972_s15 }
  0x24   : > { %p123_p0 = scmp.eq.s32.totalorder %s1399_s27, 7  ;;  %p674_p1 = scmp.lt.s32.totalorder %s1012_s25, 8 }
  0x25   : > { %s1159_s10 = sand.u32 1, %s992_s20   ;;  %s621_s12 = sshll.u32 %s1113_s5, 6 }
  0x26   : > { %p1161_p2 = por %p123_p0, %p122_p13  ;;  %s619_s9 = sshll.u32 %s1159_s10, 3 }
  0x27   : > { %s1420_s0 = sld [smem:[#allocation25_spill]]  ;;  %s199_s28 = scalar_lea.vmem [#allocation2], %s619_s9 }
  0x28   : > { %s1418_s11 = scalar_select %p1161_p2, 1, 0 }
  0x29   : > { %s207_s24 = sshll.u32 %s199_s28, 4  ;;  %p1172_p3 = pnand %p674_p1, %p1123_p5  ;;  %s208_s24 = int_to_ptr.vmem [resolvable:$true] %s207_s24 }
  0x2a   : > { %1419 = sst [smem:[#allocation24_spill]] %s1418_s11  ;;  %p625_p4 = scmp.ge.s32.totalorder %s1012_s25, 1 }
  0x2b   : > { %s196_s23 = scalar_lea.sflag [#allocation3], %s1159_s10  ;;  %p778_p6 = pneg %p1172_p3 }
  0x2c   : > { %s789_s18 = scalar_lea.vmem %s208_s24, 128  ;;  %s1014_s9 = smov [#allocation2]  }
  0x2d   : > { %s206_s29 = scalar_lea.hbm %s1420_s0, %s621_s12  ;;  %p790_p8 = scmp.ne.s32.totalorder %s208_s24, %s789_s18 }
  0x2e   : > { %s794_s28 = sshll.u32 %s1014_s9, 4  ;;  %s795_s28 = int_to_ptr.vmem [resolvable:$false] %s794_s28 }
  0x2f   : > { %p792_p9 = pnand %p790_p8, %p778_p6  ;;  %s796_s7 = scalar_lea.vmem %s795_s28, 256 }
  0x30   : > { %p797_p5 = scmp.lt.s32.totalorder %s208_s24, %s795_s28  ;;  %p798_p11 = scmp.lt.s32.totalorder %s796_s7, %s789_s18 }
  0x31   : > { %p793_p10 = pneg %p792_p9 }
  0x32   : > { %p799_p13 = por %p798_p11, %p797_p5 }
  0x34   : > { %p800_p0 = pnand %p799_p13, %p793_p10 }
  0x36   : > { %803 = shalt.err (!%p800_p0)
}
  0x37   : > { %s1015_s12 = smov 512   ;;  %s1016_s6 = smov 64  }
  0x38   : > { %s1017_s13 = smov 4   ;;  %p235_p1 = scmp.lt.s32.totalorder %s1012_s25, 9 }
  0x39   : > { %660 = dma.hbm_to_vmem [thread:$0]  (!%p1172_p3), %s206_s29, 128, %s208_s24, %s196_s23, %s1015_s12, %s1016_s6, %s1017_s13  }
  0x3a   : > { %s622_s9 = sshll.u32 %s1159_s10, 1  ;;  %s624_s0 = sshll.u32 %s1113_s5, 5 }
  0x3b   : > { %p1190_p8 = pnand %p625_p4, %p235_p1  ;;  %s228_s20 = scalar_lea.hbm %s1392_s1, %s624_s0 }
  0x3c   : > { %s221_s14 = scalar_lea.vmem [#allocation5], %s622_s9  ;;  %s218_s11 = scalar_lea.sflag [#allocation6], %s1159_s10 }
  0x3d   : > { %s230_s17 = sshll.u32 %s221_s14, 4  ;;  %s1018_s23 = smov [#allocation5]   ;;  %s231_s17 = int_to_ptr.vmem [resolvable:$true] %s230_s17 }
  0x3e   : > { %s817_s15 = scalar_lea.vmem %s231_s17, 32  ;;  %s822_s24 = sshll.u32 %s1018_s23, 4  ;;  %s823_s24 = int_to_ptr.vmem [resolvable:$false] %s822_s24 }
  0x3f   : > { %p818_p9 = scmp.ne.s32.totalorder %s231_s17, %s817_s15  ;;  %s824_s29 = scalar_lea.vmem %s823_s24, 64 }
  0x40   : > { %p825_p4 = scmp.lt.s32.totalorder %s231_s17, %s823_s24  ;;  %p826_p11 = scmp.lt.s32.totalorder %s824_s29, %s817_s15 }
  0x41   : > { %p820_p10 = pnand %p818_p9, %p778_p6 }
  0x42   : > { %p827_p13 = por %p826_p11, %p825_p4 }
  0x43   : > { %p821_p5 = pneg %p820_p10 }
  0x45   : > { %p828_p0 = pnand %p827_p13, %p821_p5 }
  0x47   : > { %831 = shalt.err (!%p828_p0)
}
  0x48   : > { %663 = dma.hbm_to_vmem [thread:$0]  (!%p1172_p3), %s228_s20, 32, %s231_s17, %s218_s11  }
  0x49   : > { %239 = sbr.rel (%p1190_p8) target bundleno = 182 (0xb6), region = 28  ;;  %s241_s0 = sand.u32 (!%p1190_p8), 1, %s988_s19  }
  0x4a   : > { %s626_s5 = sshll.u32 (!%p1190_p8), %s241_s0, 3  ;;  %s242_s14 = scalar_lea.sflag (!%p1190_p8), [#allocation3], %s241_s0 }
  0x4b   : > { %s245_s10 = scalar_lea.vmem (!%p1190_p8), [#allocation2], %s626_s5 }
  0x4e   : > { %955 = dma.done.wait (%p1130_p7), %s242_s14, 128  }
  0x4f   : > { %957 = vsyncadd (%p1130_p7), %s242_s14, 4294967168  ;;  %s627_s15 = sshll.u32 %s241_s0, 1  ;;  %s251_s12 = scalar_lea.sflag [#allocation6], %s241_s0 }
  0x50   : > { %s254_s6 = scalar_lea.vmem [#allocation5], %s627_s15 }
  0x51   : > { %959 = dma.done.wait (%p1130_p7), %s251_s12, 32  }
  0x52   : > { %961 = vsyncadd (%p1130_p7), %s251_s12, 4294967264  ;;  %s277_s17 = sand.u32 1, %s976_s16   ;;  %p631_p3 = scmp.ne.s32.totalorder %s996_s21, 0 }
  0x53   : > { %s628_s20 = sshll.u32 %s277_s17, 3 }
  0x54   : > { %s1217_s27 = scalar_lea.vmem [#allocation7], %s628_s20  ;;  %s1219_s11 = scalar_lea.vmem [#allocation8], %s628_s20 }
  0x55   : > { %s1221_s13 = scalar_lea.vmem [#allocation10], %s628_s20  ;;  %301 = sbr.rel (%p631_p3) target bundleno = 94 (0x5e), region = 40 }
  0x5a   : > { %v1019_v0 = vmov 0.0  }
  0x5b   : > { %302 = vst [vmem:[%s1217_s27] sm:$0xf] %v1019_v0  ;;  %303 = vst [vmem:[%s1217_s27 + $0x4] sm:$0xf] %v1019_v0 }
  0x5c   : > { %304 = vst [vmem:[%s1219_s11] sm:$0xf] %v1019_v0  ;;  %305 = vst [vmem:[%s1219_s11 + $0x4] sm:$0xf] %v1019_v0 }
  0x5d   : > { %306 = vst [vmem:[%s1221_s13] sm:$0xf] %v1019_v0  ;;  %307 = vst [vmem:[%s1221_s13 + $0x4] sm:$0xf] %v1019_v0 }
  0x5e PF: > { %v310_v1 = vld [vmem:[%s245_s10] sm:$0xf]  ;;  %v311_v2 = vld [vmem:[%s245_s10 + $0x4] sm:$0xf]  ;;  %v308_v3 = vlaneseq  ;;  %v1020_v8 = vmov 1966171168  }
  0x5f   : > { %v313_v4 = vmul.f32 0.5, %v310_v1  ;;  %v314_v5 = vmul.f32 0.5, %v311_v2  ;;  %v632_v7 = vld.sshfl [vmem:[%s254_s6] sm:$0x11 pattern:$0x75316420]  ;;  %v330_v9 = vunpack.c.l.s4 %v1020_v8 }
  0x60   : > { %v309_v6 = vshrl.u32 %v308_v3, 7  ;;  %v328_v11 = vcombine.high %v632_v7, %v632_v7  ;;  %v1021_v20 = vmov 0.0   ;;  %s388_s21 = sand.u32 1, %s1106_s26   ;;  %s644_s8 = sshll.u32 %s1000_s22, 7 }
  0x61   : > { %772 = vtanh.f32 %v313_v4  ;;  %v331_v10 = vunpack.c.0.s8 %v330_v9  ;;  %s407_s9 = sshll.u32 %s1217_s27, 4  ;;  %s423_s18 = sshll.u32 %s1219_s11, 4  ;;  %s1252_s9 = int_to_ptr.vmem [resolvable:$true] %s407_s9  ;;  %s1260_s18 = int_to_ptr.vmem [resolvable:$true] %s423_s18 }
  0x62   : > { %774 = vtanh.f32 %v314_v5  ;;  %v345_v13 = vsub.s32 0, %v309_v6  ;;  %v365_v31 = vld [vmem:[%s1217_s27] sm:$0xf]  ;;  %v366_v33 = vld [vmem:[%s1217_s27 + $0x4] sm:$0xf]  ;;  %s439_s28 = sshll.u32 %s1221_s13, 4  ;;  %s1250_s23 = scalar_lea.hbm %s1393_s2, %s644_s8  ;;  %s1269_s28 = int_to_ptr.vmem [resolvable:$true] %s439_s28 }
  0x63   : > { %v334_v12 = vsub.s32 %v331_v10, %v309_v6  ;;  %v371_v28 = vld [vmem:[%s1219_s11] sm:$0xf]  ;;  %v372_v35 = vld [vmem:[%s1219_s11 + $0x4] sm:$0xf]  ;;  %s1258_s0 = scalar_lea.hbm %s1394_s3, %s644_s8  ;;  %s1267_s10 = scalar_lea.hbm %s1395_s4, %s644_s8 }
  0x64   : > { %v377_v18 = vld [vmem:[%s1221_s13] sm:$0xf]  ;;  %v378_v19 = vld [vmem:[%s1221_s13 + $0x4] sm:$0xf]  ;;  %s1274_s15 = scalar_lea.sflag [#allocation4], %s277_s17  ;;  %s832_s12 = scalar_lea.vmem %s1252_s9, 128 }
  0x65   : > { %v335_v14 = vrot.slane %v632_v7, %v334_v12  ;;  %v342_v15 = vrot.slane %v328_v11, %v334_v12  ;;  %p833_p7 = scmp.ne.s32.totalorder %s1252_s9, %s832_s12  ;;  %s1022_s6 = smov [#allocation7]  }
  0x66   : > { %s836_s20 = sshll.u32 %s1022_s6, 4  ;;  %s837_s20 = int_to_ptr.vmem [resolvable:$false] %s836_s20 }
  0x67   : > { %v346_v16 = vrot.slane %v335_v14, %v345_v13  ;;  %v350_v17 = vrot.slane %v342_v15, %v345_v13  ;;  %p834_p6 = pnand %p833_p7, %p1149_p12  ;;  %p839_p8 = scmp.lt.s32.totalorder %s1252_s9, %s837_s20 }
  0x69   : > { %vm351_vm0 = vcmp.eq.s32.totalorder %v346_v16, %v309_v6  ;;  %vm352_vm1 = vcmp.eq.s32.totalorder %v350_v17, %v309_v6  ;;  %p835_p1 = pneg %p834_p6 }
  0x6a   : > { %v361_v21 = vsel %vm351_vm0, 1.0, %v1021_v20  ;;  %v362_v22 = vsel %vm352_vm1, 1.0, %v1021_v20 }
  0x6b   : > { %v379_v23 = vadd.f32 %v377_v18, %v361_v21  ;;  %v380_v24 = vadd.f32 %v378_v19, %v362_v22 }
  0x6d   : > { %381 = vst [vmem:[%s1221_s13] sm:$0xf] %v379_v23  ;;  %382 = vst [vmem:[%s1221_s13 + $0x4] sm:$0xf] %v380_v24 }
  0x6e   : > { %v773_v25 = vpop.eup %772 }
  0x6f   : > { %v775_v26 = vpop.eup %774  ;;  %v317_v27 = vmul.f32 0.5, %v773_v25 }
  0x70   : > { %v318_v29 = vmul.f32 0.5, %v775_v26 }
  0x71   : > { %v319_v30 = vadd.f32 0.5, %v317_v27 }
  0x72   : > { %v320_v32 = vadd.f32 0.5, %v318_v29 }
  0x73   : > { %v357_v34 = vmul.f32 %v319_v30, %v319_v30  ;;  %v353_v36 = vsel %vm351_vm0, %v319_v30, 0.0 }
  0x74   : > { %v358_v37 = vmul.f32 %v320_v32, %v320_v32  ;;  %v367_v38 = vadd.f32 %v365_v31, %v353_v36  ;;  %v354_v39 = vsel %vm352_vm1, %v320_v32, 0.0 }
  0x75   : > { %v373_v40 = vadd.f32 %v371_v28, %v357_v34  ;;  %v368_v41 = vadd.f32 %v366_v33, %v354_v39 }
  0x76   : > { %v374_v42 = vadd.f32 %v372_v35, %v358_v37  ;;  %369 = vst [vmem:[%s1217_s27] sm:$0xf] %v367_v38 }
  0x77   : > { %375 = vst [vmem:[%s1219_s11] sm:$0xf] %v373_v40  ;;  %370 = vst [vmem:[%s1217_s27 + $0x4] sm:$0xf] %v368_v41  ;;  %s838_s27 = scalar_lea.vmem %s837_s20, 256 }
  0x78   : > { %376 = vst [vmem:[%s1219_s11 + $0x4] sm:$0xf] %v374_v42  ;;  %p840_p9 = scmp.lt.s32.totalorder %s838_s27, %s832_s12 }
  0x7a   : > { %p841_p10 = por %p840_p9, %p839_p8 }
  0x7c   : > { %p842_p5 = pnand %p841_p10, %p835_p1 }
  0x7e   : > { %845 = shalt.err (!%p842_p5)
}
  0x7f   : > { %s846_s17 = scalar_lea.hbm %s1250_s23, 128  ;;  %s850_s8 = scalar_lea.hbm %s1393_s2, 256 }
  0x80   : > { %p847_p4 = scmp.ne.s32.totalorder %s1250_s23, %s846_s17  ;;  %p851_p0 = scmp.lt.s32.totalorder %s1250_s23, %s1393_s2 }
  0x81   : > { %p852_p3 = scmp.lt.s32.totalorder %s850_s8, %s846_s17 }
  0x82   : > { %p848_p11 = pnand %p847_p4, %p1149_p12 }
  0x83   : > { %p853_p7 = por %p852_p3, %p851_p0 }
  0x84   : > { %p849_p13 = pneg %p848_p11 }
  0x86   : > { %p854_p6 = pnand %p853_p7, %p849_p13 }
  0x88   : > { %857 = shalt.err (!%p854_p6)
}
  0x89   : > { %s1023_s24 = smov 64   ;;  %s1024_s29 = smov 4  }
  0x8a   : > { %651 = dma.vmem_to_hbm [thread:$0]  (%p1149_p12), %s1252_s9, 128, %s1250_s23, %s1274_s15, %s1023_s24, %s1023_s24, %s1024_s29  }
  0x8b   : > { %s1302_s5 = scalar_lea.sflag [#allocation9], %s388_s21  ;;  %s858_s14 = scalar_lea.vmem %s1260_s18, 128 }
  0x8c   : > { %p859_p1 = scmp.ne.s32.totalorder %s1260_s18, %s858_s14  ;;  %s1025_s12 = smov [#allocation8]  }
  0x8d   : > { %s862_s6 = sshll.u32 %s1025_s12, 4  ;;  %s863_s6 = int_to_ptr.vmem [resolvable:$false] %s862_s6 }
  0x8e   : > { %p860_p8 = pnand %p859_p1, %p1149_p12  ;;  %s864_s20 = scalar_lea.vmem %s863_s6, 256 }
  0x8f   : > { %p865_p10 = scmp.lt.s32.totalorder %s1260_s18, %s863_s6  ;;  %p866_p5 = scmp.lt.s32.totalorder %s864_s20, %s858_s14 }
  0x90   : > { %p861_p9 = pneg %p860_p8 }
  0x91   : > { %p867_p4 = por %p866_p5, %p865_p10 }
  0x93   : > { %p868_p11 = pnand %p867_p4, %p861_p9 }
  0x95   : > { %871 = shalt.err (!%p868_p11)
}
  0x96   : > { %s872_s26 = scalar_lea.hbm %s1258_s0, 128  ;;  %s876_s23 = scalar_lea.hbm %s1394_s3, 256 }
  0x97   : > { %p873_p13 = scmp.ne.s32.totalorder %s1258_s0, %s872_s26  ;;  %p877_p7 = scmp.lt.s32.totalorder %s1258_s0, %s1394_s3 }
  0x98   : > { %p878_p6 = scmp.lt.s32.totalorder %s876_s23, %s872_s26 }
  0x99   : > { %p874_p0 = pnand %p873_p13, %p1149_p12 }
  0x9a   : > { %p879_p1 = por %p878_p6, %p877_p7 }
  0x9b   : > { %p875_p3 = pneg %p874_p0 }
  0x9d   : > { %p880_p8 = pnand %p879_p1, %p875_p3 }
  0x9f   : > { %883 = shalt.err (!%p880_p8)
}
  0xa0   : > { %652 = dma.vmem_to_hbm [thread:$0]  (%p1149_p12), %s1260_s18, 128, %s1258_s0, %s1302_s5, %s1023_s24, %s1023_s24, %s1024_s29  }
  0xa1   : > { %s884_s17 = scalar_lea.vmem %s1269_s28, 128  ;;  %s1026_s11 = smov [#allocation10]  }
  0xa2   : > { %p885_p9 = scmp.ne.s32.totalorder %s1269_s28, %s884_s17  ;;  %s888_s13 = sshll.u32 %s1026_s11, 4  ;;  %s889_s13 = int_to_ptr.vmem [resolvable:$false] %s888_s13 }
  0xa3   : > { %s890_s8 = scalar_lea.vmem %s889_s13, 256  ;;  %p891_p4 = scmp.lt.s32.totalorder %s1269_s28, %s889_s13 }
  0xa4   : > { %p886_p10 = pnand %p885_p9, %p1149_p12  ;;  %p892_p11 = scmp.lt.s32.totalorder %s890_s8, %s884_s17 }
  0xa6   : > { %p887_p5 = pneg %p886_p10  ;;  %p893_p13 = por %p892_p11, %p891_p4 }
  0xa8   : > { %p894_p0 = pnand %p893_p13, %p887_p5 }
  0xaa   : > { %897 = shalt.err (!%p894_p0)
}
  0xab   : > { %s898_s22 = scalar_lea.hbm %s1267_s10, 128  ;;  %s902_s7 = scalar_lea.hbm %s1395_s4, 256 }
  0xac   : > { %p899_p3 = scmp.ne.s32.totalorder %s1267_s10, %s898_s22  ;;  %p903_p1 = scmp.lt.s32.totalorder %s1267_s10, %s1395_s4 }
  0xad   : > { %p904_p8 = scmp.lt.s32.totalorder %s902_s7, %s898_s22 }
  0xae   : > { %p900_p7 = pnand %p899_p3, %p1149_p12 }
  0xaf   : > { %p905_p9 = por %p904_p8, %p903_p1 }
  0xb0   : > { %p901_p6 = pneg %p900_p7 }
  0xb2   : > { %p906_p10 = pnand %p905_p9, %p901_p6 }
  0xb4   : > { %909 = shalt.err (!%p906_p10)
}
  0xb5   : > { %653 = dma.vmem_to_hbm [thread:$0]  (%p1149_p12), %s1269_s28, 128, %s1267_s10, %s1302_s5, %s1023_s24, %s1023_s24, %s1024_s29  }
  0xb6 PF: > { %s1423_s6 = sld [smem:[#allocation15_spill]]  ;;  %p675_p5 = scmp.ge.s32.totalorder %s1012_s25, 2 }
  0xb8   : > { %p665_p4 = pnand %p675_p5, %p1161_p2 }
  0xba   : > { %p666_p11 = pneg %p665_p4 }
  0xbc   : > { %s454_s26 = sand.u32 1, %s1423_s6  }
  0xbd   : > { %s455_s21 = scalar_lea.sflag [#allocation4], %s454_s26 }
  0xbe   : > { %963 = dma.done.wait (%p666_p11), %s455_s21, 128  }
  0xbf   : > { %965 = vsyncadd (%p666_p11), %s455_s21, 4294967168  ;;  %s1425_s30 = sadd.s32 4294967294, %s1012_s25  }
  0xc0   : > { %s463_s9 = sand.u32 1, %s1425_s30  }
  0xc1   : > { %s464_s23 = scalar_lea.sflag [#allocation9], %s463_s9 }
  0xc2   : > { %967 = dma.done.wait (%p666_p11), %s464_s23, 256  }
  0xc3   : > { %969 = vsyncadd (%p666_p11), %s464_s23, 4294967040  ;;  %s27_s25 = sadd.s32 1, %s1012_s25   ;;  %s1426_s28 = sld [smem:[#allocation16_spill]] }
  0xc4   : > { %p24_p12 = scmp.ge.s32.totalorder %s27_s25, 10   ;;  %s1427_s17 = sld [smem:[#allocation22_spill]] }
  0xc5   : > { %s1428_s10 = sld [smem:[#allocation17_spill]]  ;;  %s1434_s15 = smov %s976_s16 }
  0xc6   : > { %s1429_s20 = sld [smem:[#allocation23_spill]]  ;;  %s1436_s18 = smov %s988_s19 }
  0xc7   : > { %s1430_s21 = sld [smem:[#allocation18_spill]]  ;;  %26 = sbr.rel (!%p24_p12) target bundleno = 15 (0xf), region = 122 }
  0xc8   : > { %s1431_s22 = sld [smem:[#allocation19_spill]] }
  0xc9   : > { %s1432_s23 = sld [smem:[#allocation20_spill]]  ;;  %s1435_s16 = smov %s1426_s28 }
  0xca   : > { %s1433_s24 = sld [smem:[#allocation21_spill]] }
  0xcb   : > { %s1437_s19 = smov %s1428_s10 }
  0xcc   :  { %478 = vsyncpa [#allocation3], 1 }
  0xcd   :  { %480 = vsyncpa [#allocation3 + $0x1], 1 }
  0xce   :  { %481 = vsyncpa [#allocation6], 1 }
  0xcf   :  { %483 = vsyncpa [#allocation6 + $0x1], 1 }
  0xd0   :  { %484 = vsyncpa [#allocation4], 1 }
  0xd1   :  { %486 = vsyncpa [#allocation4 + $0x1], 1 }
  0xd2   :  { %487 = vsyncpa [#allocation9], 1 }
  0xd3   :  { %489 = vsyncpa [#allocation9 + $0x1], 1 }

</bundles_post_ra>
